<compile_context>
chip_gen: v7x
topology: tpu7x:2x2x1
jax: 0.10.0
libtpu: 0.0.40
codegen_flags: <defaults>
</compile_context>

<pallas_src>
import jax
import jax.numpy as jnp
from jax import lax
from jax.experimental import pallas as pl
from jax.experimental.pallas import tpu as pltpu


def _round_up(x, m):
    return (x + m - 1) // m * m


def _leaky_relu(h, slope=0.2):
    # max(h, slope*h) == LeakyReLU(slope) for 0 < slope < 1
    return jnp.maximum(h, slope * h)


def discriminator_kernel(x_ref, lbl_ref, embw1_ref,
                         w1_ref, b1_ref, w2_ref, b2_ref,
                         w3_ref, b3_ref, w4_ref, b4_ref,
                         out_ref):
    # x_ref:     (bb, D_img)  bf16        lbl_ref: (bb, 1) int32
    # embw1_ref: (Cp, L0)     bf16   (= Embedding table @ W1_label^T, class dim padded)
    # w1_ref:    (D_img, L0)  bf16        w2_ref: (L0, L1) bf16   w3_ref: (L1, L2) bf16
    # w4_ref:    (1, L2)      f32         b*_ref: (1, L*) / (1, 1) f32
    # out_ref:   (1, bb)      f32    (lane-dense: batch on lanes)
    bb = x_ref.shape[0]
    c_pad = embw1_ref.shape[0]

    x = x_ref[...]                                                    # (bb, D_img) bf16
    labels = lbl_ref[...]                                             # (bb, 1) int32

    # --- nn.Embedding + label-columns of Linear-1 (pre-folded): one-hot matmul ---
    one_hot = (labels == lax.broadcasted_iota(jnp.int32, (bb, c_pad), 1)
               ).astype(jnp.bfloat16)                                 # (bb, Cp)

    # --- Linear 1 over concat([x, emb]) without materializing the concat --------
    h = (jnp.dot(x, w1_ref[...], preferred_element_type=jnp.float32)
         + jnp.dot(one_hot, embw1_ref[...], preferred_element_type=jnp.float32)
         + b1_ref[...])                                               # (bb, L0) f32
    h = _leaky_relu(h)
    # TODO(synk): nn.Dropout(0.3) is the identity in eval-mode forward; training-mode RNG masks not emitted.

    # --- Linear 2 ---
    h = jnp.dot(h.astype(jnp.bfloat16), w2_ref[...],
                preferred_element_type=jnp.float32) + b2_ref[...]
    h = _leaky_relu(h)

    # --- Linear 3 ---
    h = jnp.dot(h.astype(jnp.bfloat16), w3_ref[...],
                preferred_element_type=jnp.float32) + b3_ref[...]
    h = _leaky_relu(h)

    # --- Linear 4 (L2 -> 1): VPU multiply + lane reduction (no N=1 MXU pass), then
    #     sigmoid via EUP exp + approximate reciprocal.
    logit = jnp.sum(h * w4_ref[...], axis=-1, keepdims=True) + b4_ref[...]   # (bb, 1)
    prob = pl.reciprocal(1.0 + jnp.exp(-logit), approx=True)                 # sigmoid
    out_ref[...] = prob.reshape(1, bb)                                # lane-dense store


def base_discriminator_forward(x, labels, emb_table,
                               w1, b1, w2, b2, w3, b3, w4, b4,
                               *, block_batch=256):
    """x: (B, C, H, W) float32, labels: (B,) int.  Returns (B,) probabilities."""
    B = x.shape[0]
    x_flat = x.reshape(B, -1)
    d_img = x_flat.shape[1]
    n_cls = emb_table.shape[0]
    L0, L1, L2 = w1.shape[0], w2.shape[0], w3.shape[0]
    assert w1.shape[1] == d_img + n_cls and w4.shape == (1, L2)

    # ---- one-time HBM-side weight prep: (K, N) layout + embedding fold + bf16 ----
    w1_img_t = w1[:, :d_img].T.astype(jnp.bfloat16)                   # (D_img, L0)
    emb_w1 = emb_table @ w1[:, d_img:].T                              # (C, L0) f32
    c_pad = _round_up(n_cls, 16)                                      # sublane-align (bf16)
    emb_w1 = jnp.pad(emb_w1, ((0, c_pad - n_cls), (0, 0))).astype(jnp.bfloat16)
    w2t = w2.T.astype(jnp.bfloat16)                                   # (L0, L1)
    w3t = w3.T.astype(jnp.bfloat16)                                   # (L1, L2)
    w4_row = w4.astype(jnp.float32)                                   # (1, L2), VPU path

    # ---- batch tiling: fixed bb (multiple of 8, capped for v7x VMEM), pad B ------
    # For realistic B this gives >= 2 "parallel" grid steps (both v7x TensorCores busy)
    # and a fixed, double-buffer-friendly per-step VMEM footprint.
    bb = min(block_batch, _round_up(B, 8))
    B_pad = _round_up(B, bb)
    x_bf = jnp.pad(x_flat.astype(jnp.bfloat16), ((0, B_pad - B), (0, 0)))
    labels_2d = jnp.pad(labels.astype(jnp.int32), (0, B_pad - B)).reshape(B_pad, 1)

    grid = (B_pad // bb,)
    const = lambda i: (0, 0)              # weights/biases stay resident across grid steps

    out = pl.pallas_call(
        discriminator_kernel,
        out_shape=jax.ShapeDtypeStruct((1, B_pad), jnp.float32),
        grid=grid,
        in_specs=[
            pl.BlockSpec((bb, d_img), lambda i: (i, 0)),
            pl.BlockSpec((bb, 1), lambda i: (i, 0)),
            pl.BlockSpec((c_pad, L0), const),
            pl.BlockSpec((d_img, L0), const),
            pl.BlockSpec((1, L0), const),
            pl.BlockSpec((L0, L1), const),
            pl.BlockSpec((1, L1), const),
            pl.BlockSpec((L1, L2), const),
            pl.BlockSpec((1, L2), const),
            pl.BlockSpec((1, L2), const),
            pl.BlockSpec((1, 1), const),
        ],
        out_specs=pl.BlockSpec((1, bb), lambda i: (0, i)),
        compiler_params=pltpu.CompilerParams(
            dimension_semantics=("parallel",)),
    )(x_bf, labels_2d, emb_w1,
      w1_img_t, b1.reshape(1, L0).astype(jnp.float32),
      w2t, b2.reshape(1, L1).astype(jnp.float32),
      w3t, b3.reshape(1, L2).astype(jnp.float32),
      w4_row, b4.reshape(1, 1).astype(jnp.float32))

    return out.reshape(B_pad)[:B]         # drop pad rows; PyTorch .squeeze() for B > 1


def reference_forward(x, labels, emb_table, w1, b1, w2, b2, w3, b3, w4, b4):
    """Pure-JAX f32 reference replicating the PyTorch module (eval mode)."""
    B = x.shape[0]
    x_flat = x.reshape(B, -1)
    emb = emb_table[labels]
    h = jnp.concatenate([x_flat, emb], axis=1)
    h = h @ w1.T + b1
    h = jnp.where(h > 0, h, 0.2 * h)
    h = h @ w2.T + b2
    h = jnp.where(h > 0, h, 0.2 * h)
    h = h @ w3.T + b3
    h = jnp.where(h > 0, h, 0.2 * h)
    h = h @ w4.T + b4
    return jax.nn.sigmoid(h).reshape(B)


if __name__ == "__main__":
    B = 4
    image_size, channels, class_count = 16, 1, 10
    layer_sizes = [256, 128, 64]
    d_in = image_size * image_size * channels + class_count

    key = jax.random.PRNGKey(0)
    ks = jax.random.split(key, 11)
    x = jax.random.normal(ks[0], (B, channels, image_size, image_size), jnp.float32)
    labels = jax.random.randint(ks[1], (B,), 0, class_count, jnp.int32)
    emb_table = jax.random.normal(ks[2], (class_count, class_count), jnp.float32)
    w1 = 0.05 * jax.random.normal(ks[3], (layer_sizes[0], d_in), jnp.float32)
    b1 = 0.05 * jax.random.normal(ks[4], (layer_sizes[0],), jnp.float32)
    w2 = 0.05 * jax.random.normal(ks[5], (layer_sizes[1], layer_sizes[0]), jnp.float32)
    b2 = 0.05 * jax.random.normal(ks[6], (layer_sizes[1],), jnp.float32)
    w3 = 0.05 * jax.random.normal(ks[7], (layer_sizes[2], layer_sizes[1]), jnp.float32)
    b3 = 0.05 * jax.random.normal(ks[8], (layer_sizes[2],), jnp.float32)
    w4 = 0.05 * jax.random.normal(ks[9], (1, layer_sizes[2]), jnp.float32)
    b4 = 0.05 * jax.random.normal(ks[10], (1,), jnp.float32)

    out = base_discriminator_forward(x, labels, emb_table,
                                     w1, b1, w2, b2, w3, b3, w4, b4)
    out = jax.block_until_ready(out)

    ref = reference_forward(x, labels, emb_table, w1, b1, w2, b2, w3, b3, w4, b4)
    # bf16 MXU inputs (f32 accumulate) + approx reciprocal => ~1e-3-level error on the
    # sigmoid output; tolerance loosened accordingly (flagged in the perf review).
    if not jnp.allclose(out, ref, atol=2e-2, rtol=2e-2):
        raise AssertionError(
            f"Pallas output mismatch vs reference: max abs err "
            f"{float(jnp.max(jnp.abs(out - ref)))}")
    print("KERNEL_OK")
</pallas_src>

<mosaic_0001>
module attributes {stable_mosaic.version = 11 : i64} {
  func.func @discriminator_kernel(%arg0: i32, %arg1: memref<8x256xbf16, #tpu.memory_space<vmem>>, %arg2: memref<8x1xi32, #tpu.memory_space<vmem>>, %arg3: memref<16x256xbf16, #tpu.memory_space<vmem>>, %arg4: memref<256x256xbf16, #tpu.memory_space<vmem>>, %arg5: memref<1x256xf32, #tpu.memory_space<vmem>>, %arg6: memref<256x128xbf16, #tpu.memory_space<vmem>>, %arg7: memref<1x128xf32, #tpu.memory_space<vmem>>, %arg8: memref<128x64xbf16, #tpu.memory_space<vmem>>, %arg9: memref<1x64xf32, #tpu.memory_space<vmem>>, %arg10: memref<1x64xf32, #tpu.memory_space<vmem>>, %arg11: memref<1x1xf32, #tpu.memory_space<vmem>>, %arg12: memref<1x8xf32, #tpu.memory_space<vmem>>) attributes {dimension_semantics = [#tpu.dimension_semantics<parallel>], iteration_bounds = array<i64: 1>, scalar_prefetch = 0 : i64, scratch_operands = 0 : i64, tpu.core_type = #tpu.core_type<tc>, window_params = [{transform_indices = @transform_0, window_bounds = array<i64: 8, 256>}, {transform_indices = @transform_1, window_bounds = array<i64: 8, 1>}, {pipeline_mode = #tpu.pipeline_mode<synchronous>, transform_indices = @transform_2, window_bounds = array<i64: 16, 256>}, {pipeline_mode = #tpu.pipeline_mode<synchronous>, transform_indices = @transform_3, window_bounds = array<i64: 256, 256>}, {pipeline_mode = #tpu.pipeline_mode<synchronous>, transform_indices = @transform_4, window_bounds = array<i64: 1, 256>}, {pipeline_mode = #tpu.pipeline_mode<synchronous>, transform_indices = @transform_5, window_bounds = array<i64: 256, 128>}, {pipeline_mode = #tpu.pipeline_mode<synchronous>, transform_indices = @transform_6, window_bounds = array<i64: 1, 128>}, {pipeline_mode = #tpu.pipeline_mode<synchronous>, transform_indices = @transform_7, window_bounds = array<i64: 128, 64>}, {pipeline_mode = #tpu.pipeline_mode<synchronous>, transform_indices = @transform_8, window_bounds = array<i64: 1, 64>}, {pipeline_mode = #tpu.pipeline_mode<synchronous>, transform_indices = @transform_9, window_bounds = array<i64: 1, 64>}, {pipeline_mode = #tpu.pipeline_mode<synchronous>, transform_indices = @transform_10, window_bounds = array<i64: 1, 1>}, {transform_indices = @transform_11, window_bounds = array<i64: 1, 8>}]} {
    %c0 = arith.constant 0 : index
    %c0_0 = arith.constant 0 : index
    %0 = vector.load %arg1[%c0, %c0_0] : memref<8x256xbf16, #tpu.memory_space<vmem>>, vector<8x256xbf16>
    %c0_1 = arith.constant 0 : index
    %c0_2 = arith.constant 0 : index
    %1 = vector.load %arg2[%c0_1, %c0_2] : memref<8x1xi32, #tpu.memory_space<vmem>>, vector<8x1xi32>
    %2 = tpu.iota {dimensions = array<i32: 1>} : vector<8x16xi32>
    %3 = vector.broadcast %1 : vector<8x1xi32> to vector<8x16xi32>
    %4 = arith.cmpi eq, %3, %2 : vector<8x16xi32>
    %5 = arith.extui %4 : vector<8x16xi1> to vector<8x16xi32>
    %6 = arith.sitofp %5 : vector<8x16xi32> to vector<8x16xf32>
    %7 = arith.truncf %6 : vector<8x16xf32> to vector<8x16xbf16>
    %c0_3 = arith.constant 0 : index
    %c0_4 = arith.constant 0 : index
    %8 = vector.load %arg4[%c0_3, %c0_4] : memref<256x256xbf16, #tpu.memory_space<vmem>>, vector<256x256xbf16>
    %cst = arith.constant dense<0.000000e+00> : vector<8x256xf32>
    %9 = tpu.matmul %0, %8, %cst {dimension_numbers = #tpu.dot_dimension_numbers<[1], [0], [0], [1], [0, 0, 1, 1], [], []>} : vector<8x256xbf16>, vector<256x256xbf16>, vector<8x256xf32> -> vector<8x256xf32>
    %c0_5 = arith.constant 0 : index
    %c0_6 = arith.constant 0 : index
    %10 = vector.load %arg3[%c0_5, %c0_6] : memref<16x256xbf16, #tpu.memory_space<vmem>>, vector<16x256xbf16>
    %cst_7 = arith.constant dense<0.000000e+00> : vector<8x256xf32>
    %11 = tpu.matmul %7, %10, %cst_7 {dimension_numbers = #tpu.dot_dimension_numbers<[1], [0], [0], [1], [0, 0, 1, 1], [], []>} : vector<8x16xbf16>, vector<16x256xbf16>, vector<8x256xf32> -> vector<8x256xf32>
    %12 = arith.addf %9, %11 : vector<8x256xf32>
    %c0_8 = arith.constant 0 : index
    %c0_9 = arith.constant 0 : index
    %13 = vector.load %arg5[%c0_8, %c0_9] : memref<1x256xf32, #tpu.memory_space<vmem>>, vector<1x256xf32>
    %14 = vector.broadcast %13 : vector<1x256xf32> to vector<8x256xf32>
    %15 = arith.addf %12, %14 : vector<8x256xf32>
    %cst_10 = arith.constant 2.000000e-01 : f32
    %16 = vector.broadcast %cst_10 : f32 to vector<8x256xf32>
    %17 = arith.mulf %16, %15 : vector<8x256xf32>
    %18 = arith.maximumf %15, %17 : vector<8x256xf32>
    %19 = arith.truncf %18 : vector<8x256xf32> to vector<8x256xbf16>
    %c0_11 = arith.constant 0 : index
    %c0_12 = arith.constant 0 : index
    %20 = vector.load %arg6[%c0_11, %c0_12] : memref<256x128xbf16, #tpu.memory_space<vmem>>, vector<256x128xbf16>
    %cst_13 = arith.constant dense<0.000000e+00> : vector<8x128xf32>
    %21 = tpu.matmul %19, %20, %cst_13 {dimension_numbers = #tpu.dot_dimension_numbers<[1], [0], [0], [1], [0, 0, 1, 1], [], []>} : vector<8x256xbf16>, vector<256x128xbf16>, vector<8x128xf32> -> vector<8x128xf32>
    %c0_14 = arith.constant 0 : index
    %c0_15 = arith.constant 0 : index
    %22 = vector.load %arg7[%c0_14, %c0_15] : memref<1x128xf32, #tpu.memory_space<vmem>>, vector<1x128xf32>
    %23 = vector.broadcast %22 : vector<1x128xf32> to vector<8x128xf32>
    %24 = arith.addf %21, %23 : vector<8x128xf32>
    %cst_16 = arith.constant 2.000000e-01 : f32
    %25 = vector.broadcast %cst_16 : f32 to vector<8x128xf32>
    %26 = arith.mulf %25, %24 : vector<8x128xf32>
    %27 = arith.maximumf %24, %26 : vector<8x128xf32>
    %28 = arith.truncf %27 : vector<8x128xf32> to vector<8x128xbf16>
    %c0_17 = arith.constant 0 : index
    %c0_18 = arith.constant 0 : index
    %29 = vector.load %arg8[%c0_17, %c0_18] : memref<128x64xbf16, #tpu.memory_space<vmem>>, vector<128x64xbf16>
    %cst_19 = arith.constant dense<0.000000e+00> : vector<8x64xf32>
    %30 = tpu.matmul %28, %29, %cst_19 {dimension_numbers = #tpu.dot_dimension_numbers<[1], [0], [0], [1], [0, 0, 1, 1], [], []>} : vector<8x128xbf16>, vector<128x64xbf16>, vector<8x64xf32> -> vector<8x64xf32>
    %c0_20 = arith.constant 0 : index
    %c0_21 = arith.constant 0 : index
    %31 = vector.load %arg9[%c0_20, %c0_21] : memref<1x64xf32, #tpu.memory_space<vmem>>, vector<1x64xf32>
    %32 = vector.broadcast %31 : vector<1x64xf32> to vector<8x64xf32>
    %33 = arith.addf %30, %32 : vector<8x64xf32>
    %cst_22 = arith.constant 2.000000e-01 : f32
    %34 = vector.broadcast %cst_22 : f32 to vector<8x64xf32>
    %35 = arith.mulf %34, %33 : vector<8x64xf32>
    %36 = arith.maximumf %33, %35 : vector<8x64xf32>
    %c0_23 = arith.constant 0 : index
    %c0_24 = arith.constant 0 : index
    %37 = vector.load %arg10[%c0_23, %c0_24] : memref<1x64xf32, #tpu.memory_space<vmem>>, vector<1x64xf32>
    %38 = vector.broadcast %37 : vector<1x64xf32> to vector<8x64xf32>
    %39 = arith.mulf %36, %38 : vector<8x64xf32>
    %cst_25 = arith.constant dense<0.000000e+00> : vector<8xf32>
    %40 = vector.multi_reduction <add>, %39, %cst_25 [1] : vector<8x64xf32> to vector<8xf32>
    %41 = vector.shape_cast %40 : vector<8xf32> to vector<8x1xf32>
    %c0_26 = arith.constant 0 : index
    %c0_27 = arith.constant 0 : index
    %42 = vector.load %arg11[%c0_26, %c0_27] : memref<1x1xf32, #tpu.memory_space<vmem>>, vector<1x1xf32>
    %43 = vector.broadcast %42 : vector<1x1xf32> to vector<8x1xf32>
    %44 = arith.addf %41, %43 : vector<8x1xf32>
    %cst_28 = arith.constant 0.000000e+00 : f32
    %45 = vector.broadcast %cst_28 : f32 to vector<8x1xf32>
    %46 = arith.subf %45, %44 : vector<8x1xf32>
    %47 = math.exp %46 : vector<8x1xf32>
    %cst_29 = arith.constant 1.000000e+00 : f32
    %48 = vector.broadcast %cst_29 : f32 to vector<8x1xf32>
    %49 = arith.addf %48, %47 : vector<8x1xf32>
    %50 = tpu.reciprocal %49 {approx = true} : vector<8x1xf32> -> vector<8x1xf32>
    %51 = vector.shape_cast %50 : vector<8x1xf32> to vector<1x8xf32>
    %c0_30 = arith.constant 0 : index
    %c0_31 = arith.constant 0 : index
    %52 = vector.load %arg12[%c0_30, %c0_31] : memref<1x8xf32, #tpu.memory_space<vmem>>, vector<1x8xf32>
    tpu.vector_store %arg12[%c0_30, %c0_31], %51 {strides = array<i32>} : memref<1x8xf32, #tpu.memory_space<vmem>>, vector<1x8xf32>,
    return
  }
  func.func @transform_0(%arg0: i32) -> (i32, i32) {
    %c0_i32 = arith.constant 0 : i32
    %c0_i32_0 = arith.constant 0 : i32
    return %arg0, %c0_i32 : i32, i32
  }
  func.func @transform_1(%arg0: i32) -> (i32, i32) {
    %c0_i32 = arith.constant 0 : i32
    %c0_i32_0 = arith.constant 0 : i32
    return %arg0, %c0_i32 : i32, i32
  }
  func.func @transform_2(%arg0: i32) -> (i32, i32) {
    %c0_i32 = arith.constant 0 : i32
    %c0_i32_0 = arith.constant 0 : i32
    %c0_i32_1 = arith.constant 0 : i32
    return %c0_i32, %c0_i32_0 : i32, i32
  }
  func.func @transform_3(%arg0: i32) -> (i32, i32) {
    %c0_i32 = arith.constant 0 : i32
    %c0_i32_0 = arith.constant 0 : i32
    %c0_i32_1 = arith.constant 0 : i32
    return %c0_i32, %c0_i32_0 : i32, i32
  }
  func.func @transform_4(%arg0: i32) -> (i32, i32) {
    %c0_i32 = arith.constant 0 : i32
    %c0_i32_0 = arith.constant 0 : i32
    %c0_i32_1 = arith.constant 0 : i32
    return %c0_i32, %c0_i32_0 : i32, i32
  }
  func.func @transform_5(%arg0: i32) -> (i32, i32) {
    %c0_i32 = arith.constant 0 : i32
    %c0_i32_0 = arith.constant 0 : i32
    %c0_i32_1 = arith.constant 0 : i32
    return %c0_i32, %c0_i32_0 : i32, i32
  }
  func.func @transform_6(%arg0: i32) -> (i32, i32) {
    %c0_i32 = arith.constant 0 : i32
    %c0_i32_0 = arith.constant 0 : i32
    %c0_i32_1 = arith.constant 0 : i32
    return %c0_i32, %c0_i32_0 : i32, i32
  }
  func.func @transform_7(%arg0: i32) -> (i32, i32) {
    %c0_i32 = arith.constant 0 : i32
    %c0_i32_0 = arith.constant 0 : i32
    %c0_i32_1 = arith.constant 0 : i32
    return %c0_i32, %c0_i32_0 : i32, i32
  }
  func.func @transform_8(%arg0: i32) -> (i32, i32) {
    %c0_i32 = arith.constant 0 : i32
    %c0_i32_0 = arith.constant 0 : i32
    %c0_i32_1 = arith.constant 0 : i32
    return %c0_i32, %c0_i32_0 : i32, i32
  }
  func.func @transform_9(%arg0: i32) -> (i32, i32) {
    %c0_i32 = arith.constant 0 : i32
    %c0_i32_0 = arith.constant 0 : i32
    %c0_i32_1 = arith.constant 0 : i32
    return %c0_i32, %c0_i32_0 : i32, i32
  }
  func.func @transform_10(%arg0: i32) -> (i32, i32) {
    %c0_i32 = arith.constant 0 : i32
    %c0_i32_0 = arith.constant 0 : i32
    %c0_i32_1 = arith.constant 0 : i32
    return %c0_i32, %c0_i32_0 : i32, i32
  }
  func.func @transform_11(%arg0: i32) -> (i32, i32) {
    %c0_i32 = arith.constant 0 : i32
    %c0_i32_0 = arith.constant 0 : i32
    return %c0_i32, %arg0 : i32, i32
  }
}

</mosaic_0001>

<bundles_post_ra>
// kernel: tpu_custom_call.1
= control target key start
LH: loop header
LB: loop body
LE: loop exit
PB: predicated region body
PF: predicated region fallthrough
CT: control target
= control target key end

     0   :  { %s1199_s0 = inlined_call_operand.vmem [shape: bf16[8,256], index: 0, kind: input, shape index: {}]   ;;  %s1200_s1 = inlined_call_operand.vmem [shape: s32[8,1], index: 1, kind: input, shape index: {}]   ;;  %s1201_s2 = inlined_call_operand.vmem [shape: bf16[16,256], index: 2, kind: input, shape index: {}]   ;;  %s1202_s3 = inlined_call_operand.hbm [shape: bf16[256,256], index: 3, kind: input, shape index: {}]   ;;  %s1203_s4 = inlined_call_operand.vmem [shape: f32[1,256], index: 4, kind: input, shape index: {}]   ;;  %s1204_s5 = inlined_call_operand.hbm [shape: bf16[256,128], index: 5, kind: input, shape index: {}]   ;;  %s1205_s6 = inlined_call_operand.vmem [shape: f32[1,128], index: 6, kind: input, shape index: {}]   ;;  %s1206_s7 = inlined_call_operand.vmem [shape: bf16[128,64], index: 7, kind: input, shape index: {}]   ;;  %s1207_s8 = inlined_call_operand.vmem [shape: f32[1,64], index: 8, kind: input, shape index: {}]   ;;  %s1208_s9 = inlined_call_operand.vmem [shape: f32[1,64], index: 9, kind: input, shape index: {}]   ;;  %s1209_s10 = inlined_call_operand.<no memory space> [shape: f32[1,1], index: 10, kind: input, shape index: {}]   ;;  %s1210_s11 = inlined_call_operand.hbm [shape: f32[1,8], index: 11, kind: output, shape index: {}]  }
   0x1   :  { %v16_v0 = vstv %s1209_s10 }
   0x2   :  { %17 = vst [vmem:[#allocation2] sm:$0x1] %v16_v0 }
   0x3   :  { %18 = vsyncpa [#allocation4], 0 }
   0x4   :  { %19 = vsyncpa [#allocation7], 0 }
   0x5   :  { %20 = vsyncpa [#allocation5], 0  ;;  %s1023_s19 = smov [#allocation3]   ;;  %s951_s23 = scalar_lea.hbm %s1202_s3, 4096 }
   0x6   :  { %s32_s20 = sshll.u32 %s1023_s19, 4  ;;  %p952_p0 = scmp.ne.s32.totalorder %s1202_s3, %s951_s23  ;;  %s33_s20 = int_to_ptr.vmem [resolvable:$true] %s32_s20 }
   0x7   :  { %p955_p1 = scmp.lt.u32.totalorder %s951_s23, %s1202_s3 }
   0x9   :  { %p957_p2 = pnand %p955_p1, %p952_p0 }
   0xb   :  { %960 = shalt.err (!%p957_p2)
}
   0xc   :  { %s961_s10 = scalar_lea.vmem %s33_s20, 4096  ;;  %p966_p4 = scmp.lt.s32.totalorder %s33_s20, %s33_s20 }
   0xd   :  { %p962_p3 = scmp.ne.s32.totalorder %s33_s20, %s961_s10  ;;  %p967_p5 = scmp.lt.s32.totalorder %s961_s10, %s961_s10 }
   0xf   :  { %p968_p6 = por %p967_p5, %p966_p4 }
  0x11   :  { %p969_p7 = pnand %p968_p6, %p962_p3 }
  0x13   :  { %972 = shalt.err (!%p969_p7)
}
  0x14   :  { %s1024_s28 = smov 128   ;;  %s1025_s29 = smov 8  }
  0x15   :  { %38 = dma.hbm_to_vmem [thread:$0]  %s1202_s3, 4096, %s33_s20, [#allocation4], %s1024_s28, %s1024_s28, %s1025_s29  }
  0x16   :  { %s1026_s13 = smov [#allocation6]   ;;  %s973_s17 = scalar_lea.hbm %s1204_s5, 2048 }
  0x17   :  { %s46_s14 = sshll.u32 %s1026_s13, 4  ;;  %p974_p8 = scmp.ne.s32.totalorder %s1204_s5, %s973_s17  ;;  %s47_s14 = int_to_ptr.vmem [resolvable:$true] %s46_s14 }
  0x18   :  { %p977_p9 = scmp.lt.u32.totalorder %s973_s17, %s1204_s5 }
  0x1a   :  { %p979_p10 = pnand %p977_p9, %p974_p8 }
  0x1c   :  { %982 = shalt.err (!%p979_p10)
}
  0x1d   :  { %s983_s23 = scalar_lea.vmem %s47_s14, 2048  ;;  %p988_p12 = scmp.lt.s32.totalorder %s47_s14, %s47_s14 }
  0x1e   :  { %p984_p11 = scmp.ne.s32.totalorder %s47_s14, %s983_s23  ;;  %p989_p13 = scmp.lt.s32.totalorder %s983_s23, %s983_s23 }
  0x20   :  { %p990_p0 = por %p989_p13, %p988_p12 }
  0x22   :  { %p991_p1 = pnand %p990_p0, %p984_p11 }
  0x24   :  { %994 = shalt.err (!%p991_p1)
}
  0x25   :  { %s1027_s3 = smov 64   ;;  %s1028_s20 = smov 4  }
  0x26   :  { %52 = dma.hbm_to_vmem [thread:$0]  %s1204_s5, 2048, %s47_s14, [#allocation7], %s1027_s3, %s1027_s3, %s1028_s20  }
  0x27   :  { %1017 = dma.done.wait [#allocation4], 4096  }
  0x28   :  { %1018 = vsyncadd [#allocation4], 4294963200 }
  0x29   :  { %1019 = dma.done.wait [#allocation7], 2048  }
  0x2a   :  { %1020 = vsyncadd [#allocation7], 4294965248  ;;  %v1029_v1 = vmov 0   ;;  %v71_v2 = vld [vmem:[%s1200_s1] sm:$0xff]  ;;  %v875_v6 = vld [vmem:[#allocation3 + $0x10] ss:$8 sps:$4 sm:$0xff]   ;;  %v72_v41 = vlaneseq }
  0x2b   :  { %868 = vset.pattern.permute.xlu0 %v1029_v1  ;;  %161 = vmatprep.mubr.bf16.mxu0 %v1029_v1  ;;  %v870_v3 = vld [vmem:[#allocation3 + $0x4] ss:$8 sps:$4 sm:$0xff]   ;;  %v872_v4 = vld [vmem:[#allocation3] ss:$8 sps:$4 sm:$0xff]   ;;  %v873_v5 = vld [vmem:[#allocation3 + $0x14] ss:$8 sps:$4 sm:$0xff]  }
  0x2c   :  { %869 = vset.pattern.permute.xlu1 %v1029_v1  ;;  %75 = vperm.xlu0 %868, %v71_v2   ;;  %v876_v7 = vld [vmem:[#allocation3 + $0x24] ss:$8 sps:$4 sm:$0xff]   ;;  %v878_v8 = vld [vmem:[#allocation3 + $0x20] ss:$8 sps:$4 sm:$0xff]   ;;  %v879_v9 = vld [vmem:[#allocation3 + $0x34] ss:$8 sps:$4 sm:$0xff]  }
  0x2d   :  { %337 = vmatprep.subr.bf16.mxu1 %v870_v3  ;;  %v881_v10 = vld [vmem:[#allocation3 + $0x30] ss:$8 sps:$4 sm:$0xff]   ;;  %v882_v11 = vld [vmem:[#allocation3 + $0x44] ss:$8 sps:$4 sm:$0xff]   ;;  %v884_v12 = vld [vmem:[#allocation3 + $0x40] ss:$8 sps:$4 sm:$0xff]  }
  0x2e   :  { %338 = vmatpush1.bf16.msra.mxu1 %v872_v4  ;;  %v885_v13 = vld [vmem:[#allocation3 + $0x54] ss:$8 sps:$4 sm:$0xff]   ;;  %v887_v14 = vld [vmem:[#allocation3 + $0x50] ss:$8 sps:$4 sm:$0xff]   ;;  %v888_v15 = vld [vmem:[#allocation3 + $0x64] ss:$8 sps:$4 sm:$0xff]  }
  0x2f   :  { %339 = vmatprep.subr.bf16.mxu1 %v873_v5  ;;  %v890_v16 = vld [vmem:[#allocation3 + $0x60] ss:$8 sps:$4 sm:$0xff]   ;;  %v891_v22 = vld [vmem:[#allocation3 + $0x74] ss:$8 sps:$4 sm:$0xff]   ;;  %v893_v23 = vld [vmem:[#allocation3 + $0x70] ss:$8 sps:$4 sm:$0xff]  }
  0x30   :  { %v918_v17 = vld [vmem:[%s1201_s2 + $0x4] ss:$8 sps:$4 sm:$0xff]   ;;  %v922_v20 = vld [vmem:[%s1201_s2] ss:$8 sps:$4 sm:$0xff]   ;;  %v899_v27 = vld [vmem:[#allocation3 + $0x90] ss:$8 sps:$4 sm:$0xff]  }
  0x31   :  { %v70_v18 = vld [vmem:[%s1199_s0] sm:$0xff]  ;;  %129 = vmatprep.subr.bf16.mxu0 %v918_v17  ;;  %v905_v31 = vld [vmem:[#allocation3 + $0xb0] ss:$8 sps:$4 sm:$0xff]   ;;  %v1132_v42 = vand.u32 127, %v72_v41  ;;  %v1030_v44 = vmov 0.0   ;;  %vm125_vm1 = vcmask 130048  }
  0x32   :  { %340 = vmatpush1.bf16.msra.mxu1 %v875_v6  ;;  %v746_v19 = vcombine.high %v70_v18, %v70_v18  ;;  %v923_v21 = vld [vmem:[#allocation6 + $0x40] sm:$0xff]   ;;  %130 = vmatpush1.bf16.msra.mxu0 %v922_v20  ;;  %v897_v26 = vld [vmem:[#allocation3 + $0x94] ss:$8 sps:$4 sm:$0xff]   ;;  %v911_v35 = vld [vmem:[#allocation3 + $0xd0] ss:$8 sps:$4 sm:$0xff]   ;;  %v745_v40 = vcombine.low %v70_v18, %v70_v18  ;;  %v1137_v2 = vshrl.u32 %v72_v41, 7 }
  0x33   :  { %341 = vmatprep.subr.bf16.mxu1 %v876_v7  ;;  %807 = vmatprep.subr.bf16.mxu0 %v923_v21  ;;  %v894_v24 = vld [vmem:[#allocation3 + $0x84] ss:$8 sps:$4 sm:$0xff]   ;;  %v896_v25 = vld [vmem:[#allocation3 + $0x80] ss:$8 sps:$4 sm:$0xff]   ;;  %v903_v30 = vld [vmem:[#allocation3 + $0xb4] ss:$8 sps:$4 sm:$0xff]  }
  0x34   :  { %369 = vmatprep.mubr.bf16.mxu1 %v746_v19  ;;  %v900_v28 = vld [vmem:[#allocation3 + $0xa4] ss:$8 sps:$4 sm:$0xff]   ;;  %v902_v29 = vld [vmem:[#allocation3 + $0xa0] ss:$8 sps:$4 sm:$0xff]   ;;  %v909_v34 = vld [vmem:[#allocation3 + $0xd4] ss:$8 sps:$4 sm:$0xff]  }
  0x35   :  { %v906_v32 = vld [vmem:[#allocation3 + $0xc4] ss:$8 sps:$4 sm:$0xff]   ;;  %v908_v33 = vld [vmem:[#allocation3 + $0xc0] ss:$8 sps:$4 sm:$0xff]   ;;  %v915_v38 = vld [vmem:[#allocation3 + $0xf4] ss:$8 sps:$4 sm:$0xff]  }
  0x36   :  { %342 = vmatpush1.bf16.msra.mxu1 %v878_v8  ;;  %v912_v36 = vld [vmem:[#allocation3 + $0xe4] ss:$8 sps:$4 sm:$0xff]   ;;  %v914_v37 = vld [vmem:[#allocation3 + $0xe0] ss:$8 sps:$4 sm:$0xff]   ;;  %v917_v39 = vld [vmem:[#allocation3 + $0xf0] ss:$8 sps:$4 sm:$0xff]  }
  0x37   :  { %343 = vmatprep.subr.bf16.mxu1 %v879_v9  ;;  %v924_v46 = vld [vmem:[#allocation6] sm:$0xff]   ;;  %v925_v48 = vld [vmem:[#allocation6 + $0x48] sm:$0xff]   ;;  %v927_v50 = vld [vmem:[#allocation6 + $0x50] sm:$0xff]   ;;  %v382_v3 = vsub.s32 0, %v1137_v2  ;;  %v386_v5 = vsub.s32 1, %v1137_v2  ;;  %vm1031_vm2 = vmmov 0  }
  0x38   :  { %v926_v49 = vld [vmem:[#allocation6 + $0x8] sm:$0xff]   ;;  %v928_v51 = vld [vmem:[#allocation6 + $0x10] sm:$0xff]   ;;  %v929_v52 = vld [vmem:[#allocation6 + $0x58] sm:$0xff]   ;;  %vm697_vm3 = vcmask 523264   ;;  %vm723_vm4 = vcmask 57344  }
  0x39   :  { %v930_v53 = vld [vmem:[#allocation6 + $0x18] sm:$0xff]   ;;  %v931_v54 = vld [vmem:[#allocation6 + $0x60] sm:$0xff]   ;;  %v933_v56 = vld [vmem:[#allocation6 + $0x68] sm:$0xff]  }
  0x3a   :  { %344 = vmatpush1.bf16.msra.mxu1 %v881_v10  ;;  %v932_v55 = vld [vmem:[#allocation6 + $0x20] sm:$0xff]   ;;  %v934_v57 = vld [vmem:[#allocation6 + $0x28] sm:$0xff]   ;;  %v935_v58 = vld [vmem:[#allocation6 + $0x70] sm:$0xff]  }
  0x3b   :  { %345 = vmatprep.subr.bf16.mxu1 %v882_v11  ;;  %v936_v59 = vld [vmem:[#allocation6 + $0x30] sm:$0xff]   ;;  %v937_v60 = vld [vmem:[#allocation6 + $0x78] sm:$0xff]  }
  0x3c   :  { %v938_v61 = vld [vmem:[#allocation6 + $0x38] sm:$0xff]  }
  0x3d   :  { %v378_v4 = vld [vmem:[%s1203_s4] sm:$0x3] }
  0x3e   :  { %346 = vmatpush1.bf16.msra.mxu1 %v884_v12  ;;  %v383_v6 = vrot.slane %v378_v4, %v382_v3  ;;  %v387_v8 = vrot.slane %v378_v4, %v386_v5  ;;  %v939_v21 = vld [vmem:[%s1206_s7] sm:$0xff]  }
  0x3f   :  { %347 = vmatprep.subr.bf16.mxu1 %v885_v13 }
  0x42   :  { %348 = vmatpush1.bf16.msra.mxu1 %v887_v14 }
  0x43   :  { %349 = vmatprep.subr.bf16.mxu1 %v888_v15 }
  0x46   :  { %350 = vmatpush1.bf16.msra.mxu1 %v890_v16 }
  0x47   :  { %351 = vmatprep.subr.bf16.mxu1 %v891_v22 }
  0x4a   :  { %352 = vmatpush1.bf16.msra.mxu1 %v893_v23  ;;  %v940_v23 = vld [vmem:[%s1206_s7 + $0x8] sm:$0xff]  }
  0x4b   :  { %353 = vmatprep.subr.bf16.mxu1 %v894_v24  ;;  %v941_v24 = vld [vmem:[%s1206_s7 + $0x10] sm:$0xff]  }
  0x4e   :  { %354 = vmatpush1.bf16.msra.mxu1 %v896_v25  ;;  %v942_v25 = vld [vmem:[%s1206_s7 + $0x18] sm:$0xff]  }
  0x4f   :  { %355 = vmatprep.subr.bf16.mxu1 %v897_v26  ;;  %v943_v26 = vld [vmem:[%s1206_s7 + $0x20] sm:$0xff]  }
  0x52   :  { %356 = vmatpush1.bf16.msra.mxu1 %v899_v27  ;;  %v944_v27 = vld [vmem:[%s1206_s7 + $0x28] sm:$0xff]  }
  0x53   :  { %357 = vmatprep.subr.bf16.mxu1 %v900_v28  ;;  %v945_v28 = vld [vmem:[%s1206_s7 + $0x30] sm:$0xff]  }
  0x56   :  { %358 = vmatpush1.bf16.msra.mxu1 %v902_v29  ;;  %v946_v29 = vld [vmem:[%s1206_s7 + $0x38] sm:$0xff]  }
  0x57   :  { %359 = vmatprep.subr.bf16.mxu1 %v903_v30 }
  0x5a   :  { %360 = vmatpush1.bf16.msra.mxu1 %v905_v31  ;;  %v779_v31 = vld [vmem:[%s1205_s6] ss:$0 sm:$0xff] }
  0x5b   :  { %361 = vmatprep.subr.bf16.mxu1 %v906_v32 }
  0x5e   :  { %362 = vmatpush1.bf16.msra.mxu1 %v908_v33 }
  0x5f   :  { %363 = vmatprep.subr.bf16.mxu1 %v909_v34 }
  0x62   :  { %364 = vmatpush1.bf16.msra.mxu1 %v911_v35 }
  0x63   :  { %365 = vmatprep.subr.bf16.mxu1 %v912_v36 }
  0x66   :  { %366 = vmatpush1.bf16.msra.mxu1 %v914_v37 }
  0x67   :  { %367 = vmatprep.subr.bf16.mxu1 %v915_v38 }
  0x6a   :  { %368 = vmatpush1.bf16.msra.mxu1 %v917_v39 }
  0x6d   :  { %370 = vmatmul.mubr.bf16.vlgmr.msra.gmra.mrb[0].mxu1 %v745_v40  ;;  %v796_v40 = vld [vmem:[%s1207_s8] ss:$0 sm:$0xff]  ;;  %s1032_s8 = smov [#allocation8]  }
  0xab   :  { %v76_v43 = vpop.permute.xlu0 %75 }
  0xac   :  { %vm77_vm0 = vcmp.eq.s32.totalorder %v76_v43, %v1132_v42 }
  0xad   :  { %v741_v45 = vsel %vm77_vm0, 1.0, %v1030_v44 }
  0xae   :  { %v80_v47 = vpack.c.bf16 %v741_v45, %v741_v45 }
  0xb0   :  { %744 = vmatmul.mubr.msk.bf16.vlgmr.msra.gmra.mrb[0].mxu0 %vm125_vm1, %v80_v47 }
  0xb1   :  { %808 = vmatpush3.bf16.msra.mxu0 %v924_v46 }
  0xb2   :  { %809 = vmatprep.subr.bf16.mxu0 %v925_v48  ;;  %v805_v48 = vld [vmem:[%s1208_s9] ss:$0 sm:$0xff]  ;;  %s731_s9 = sshll.u32 %s1032_s8, 4  ;;  %s732_s9 = int_to_ptr.vmem [resolvable:$true] %s731_s9 }
  0xb3   :  { %s995_s10 = scalar_lea.vmem %s732_s9, 16  ;;  %s999_s28 = scalar_lea.vmem %s732_s9, 32 }
  0xb4   :  { %p996_p2 = scmp.ne.s32.totalorder %s732_s9, %s995_s10  ;;  %p1000_p3 = scmp.lt.s32.totalorder %s732_s9, %s732_s9 }
  0xb5   :  { %810 = vmatpush3.bf16.msra.mxu0 %v926_v49  ;;  %p1001_p4 = scmp.lt.s32.totalorder %s999_s28, %s995_s10 }
  0xb6   :  { %811 = vmatprep.subr.bf16.mxu0 %v927_v50 }
  0xb7   :  { %p1002_p5 = por %p1001_p4, %p1000_p3 }
  0xb9   :  { %812 = vmatpush3.bf16.msra.mxu0 %v928_v51  ;;  %p1003_p6 = pnand %p1002_p5, %p996_p2 }
  0xba   :  { %813 = vmatprep.subr.bf16.mxu0 %v929_v52  ;;  %v806_v52 = vld [vmem:[#allocation2] ss:$0 sm:$0xff] }
  0xbd   :  { %814 = vmatpush3.bf16.msra.mxu0 %v930_v53 }
  0xbe   :  { %815 = vmatprep.subr.bf16.mxu0 %v931_v54 }
  0xc1   :  { %816 = vmatpush3.bf16.msra.mxu0 %v932_v55 }
  0xc2   :  { %817 = vmatprep.subr.bf16.mxu0 %v933_v56 }
  0xc5   :  { %818 = vmatpush3.bf16.msra.mxu0 %v934_v57 }
  0xc6   :  { %819 = vmatprep.subr.bf16.mxu0 %v935_v58 }
  0xc9   :  { %820 = vmatpush3.bf16.msra.mxu0 %v936_v59 }
  0xca   :  { %821 = vmatprep.subr.bf16.mxu0 %v937_v60  ;;  %v720_v60 = vsub.s32 %v1132_v42, %v1137_v2 }
  0xcd   :  { %822 = vmatpush3.bf16.msra.mxu0 %v938_v61 }
  0xce   :  { %838 = vmatprep.subr.bf16.mxu0 %v1030_v44 }
 0x140   :  { %v371_v62 = vpop.f32.mrb[0].mxu1 }
 0x141   :  { %v373_v63 = vpop.f32.mrb[1].mxu1 }
 0x142   :  { %v375_v0 = vpop.f32.mrb[2].mxu1 }
 0x143   :  { %v376_v1 = vpop.f32.mrb[3].mxu1 }
 0x183   :  { %v163_v7 = vpop.f32.mrb[0].mxu0 }
 0x184   :  { %v372_v9 = vadd.f32 %v371_v62, %v163_v7  ;;  %v165_v10 = vpop.f32.mrb[1].mxu0 }
 0x185   :  { %v374_v11 = vadd.f32 %v373_v63, %v165_v10  ;;  %v167_v12 = vpop.f32.mrb[2].mxu0 }
 0x186   :  { %v390_v13 = vadd.f32 %v383_v6, %v372_v9  ;;  %v168_v14 = vpop.f32.mrb[3].mxu0 }
 0x187   :  { %v391_v15 = vadd.f32 %v387_v8, %v374_v11 }
 0x188   :  { %v392_v16 = vmul.f32 0.2, %v390_v13 }
 0x189   :  { %v393_v17 = vmul.f32 0.2, %v391_v15 }
 0x18a   :  { %v394_v18 = vmax.f32 %v390_v13, %v392_v16 }
 0x18b   :  { %v395_v19 = vmax.f32 %v391_v15, %v393_v17 }
 0x18c   :  { %v396_v22 = vpack.c.bf16 %v394_v18, %v394_v18 }
 0x18d   :  { %v397_v20 = vpack.c.bf16 %v395_v19, %v395_v19 }
 0x18f   :  { %565 = vmatprep.mubr.bf16.mxu0 %v397_v20 }
 0x190   :  { %566 = vmatmul.mubr.bf16.vlgmr.msra.gmra.mrb[4].mxu0 %v396_v22 }
 0x191   :  { %839 = vmatpush3.bf16.msra.mxu0 %v939_v21  ;;  %854 = vmatprep.mubr.msk.bf16.mxu0 %vm1031_vm2, %v1030_v44 }
 0x192   :  { %840 = vmatprep.subr.bf16.mxu0 %v1030_v44 }
 0x195   :  { %841 = vmatpush3.bf16.msra.mxu0 %v940_v23 }
 0x196   :  { %842 = vmatprep.subr.bf16.mxu0 %v1030_v44 }
 0x199   :  { %843 = vmatpush3.bf16.msra.mxu0 %v941_v24 }
 0x19a   :  { %844 = vmatprep.subr.bf16.mxu0 %v1030_v44 }
 0x19d   :  { %845 = vmatpush3.bf16.msra.mxu0 %v942_v25 }
 0x19e   :  { %846 = vmatprep.subr.bf16.mxu0 %v1030_v44 }
 0x1a1   :  { %847 = vmatpush3.bf16.msra.mxu0 %v943_v26 }
 0x1a2   :  { %848 = vmatprep.subr.bf16.mxu0 %v1030_v44 }
 0x1a5   :  { %849 = vmatpush3.bf16.msra.mxu0 %v944_v27 }
 0x1a6   :  { %850 = vmatprep.subr.bf16.mxu0 %v1030_v44 }
 0x1a9   :  { %851 = vmatpush3.bf16.msra.mxu0 %v945_v28 }
 0x1aa   :  { %852 = vmatprep.subr.bf16.mxu0 %v1030_v44 }
 0x1ad   :  { %853 = vmatpush3.bf16.msra.mxu0 %v946_v29 }
 0x263   :  { %v823_v30 = vpop.f32.mrb[4].mxu0 }
 0x264   :  { %v824_v32 = vpop.f32.mrb[5].mxu0 }
 0x265   :  { %v825_v33 = vadd.f32 %v824_v32, %v823_v30  ;;  %v826_v34 = vpop.f32.mrb[6].mxu0 }
 0x266   :  { %v827_v35 = vpop.f32.mrb[7].mxu0 }
 0x267   :  { %v568_v36 = vadd.f32 %v825_v33, %v779_v31 }
 0x269   :  { %v573_v37 = vmul.f32 0.2, %v568_v36 }
 0x26b   :  { %v574_v38 = vmax.f32 %v568_v36, %v573_v37 }
 0x26d   :  { %v575_v39 = vpack.c.bf16 %v574_v38, %v574_v38 }
 0x26f   :  { %855 = vmatmul.mubr.bf16.vlgmr.msra.gmra.mrb[8].mxu0 %v575_v39 }
 0x342   :  { %v681_v41 = vpop.f32.mrb[8].mxu0 }
 0x343   :  { %v682_v43 = vadd.f32 %v796_v40, %v681_v41  ;;  %v856_v44 = vpop.f32.mrb[9].mxu0 }
 0x344   :  { %v684_v45 = vpop.f32.mrb[10].mxu0 }
 0x345   :  { %v687_v46 = vmul.f32 0.2, %v682_v43  ;;  %v857_v47 = vpop.f32.mrb[11].mxu0 }
 0x347   :  { %v688_v49 = vmax.f32 %v682_v43, %v687_v46 }
 0x349   :  { %v696_v50 = vmul.f32 %v805_v48, %v688_v49 }
 0x34b   :  { %v698_v51 = vsel %vm697_vm3, %v696_v50, 0.0 }
 0x34c   :  { %699 = vadd.xlane.f32.xlu0 %v698_v51 }
 0x3d9   :  { %v700_v53 = vpop.xlane.xlu0 %699 }
 0x3da   :  { %v708_v54 = vadd.f32 %v806_v52, %v700_v53 }
 0x3dc   :  { %v709_v55 = vsub.f32 0.0, %v708_v54 }
 0x3de   :  { %v710_v56 = vmul.f32 1.442695, %v709_v55 }
 0x3e0   :  { %947 = vpow2.f32 %v710_v56 }
 0x3ea   :  { %v948_v57 = vpop.eup %947 }
 0x3eb   :  { %v712_v58 = vadd.f32 1.0, %v948_v57 }
 0x3ed   :  { %949 = vrcp.f32 %v712_v58 }
 0x3f7   :  { %v950_v59 = vpop.eup %949 }
 0x3f8   :  { %716 = vperm.xlu1 %869, %v950_v59  }
 0x477   :  { %v717_v61 = vpop.permute.xlu1 %716 }
 0x478   :  { %v721_v62 = vrot.slane %v717_v61, %v720_v60 }
 0x47a   :  { %724 = vst.msk [vmem:[#allocation8] sm:$0x1] %vm723_vm4, %v721_v62 }
 0x47b   :  { %1006 = shalt.err (!%p1003_p6)
}
 0x47c   :  { %s1007_s0 = scalar_lea.hbm %s1210_s11, 16 }
 0x47d   :  { %p1008_p7 = scmp.ne.s32.totalorder %s1210_s11, %s1007_s0  ;;  %p1011_p8 = scmp.lt.u32.totalorder %s1007_s0, %s1210_s11 }
 0x47f   :  { %p1013_p9 = pnand %p1011_p8, %p1008_p7 }
 0x481   :  { %1016 = shalt.err (!%p1013_p9)
}
 0x482   :  { %734 = dma.vmem_to_hbm [thread:$0]  %s732_s9, 16, %s1210_s11, [#allocation5]  }
 0x483   :  { %1021 = dma.done.wait [#allocation5], 16  }
 0x484   :  { %1022 = vsyncadd [#allocation5], 4294967280 }
 0x485   :  { %738 = vsyncpa [#allocation4], 1 }
 0x486   :  { %739 = vsyncpa [#allocation7], 1 }
 0x487   :  { %740 = vsyncpa [#allocation5], 1 }

</bundles_post_ra>
